<compile_context>
chip_gen: v5e
topology: v5e:2x2
jax: 0.10.0
libtpu: 0.0.40
codegen_flags: <defaults>
</compile_context>

<pallas_src>
import functools

import jax
import jax.numpy as jnp
from jax.experimental import pallas as pl
from jax.experimental.pallas import tpu as pltpu


def _round_up(x, m):
    return ((x + m - 1) // m) * m


def _attn_kernel(ids_ref, mask_ref, table_ref, wq_ref, bq_ref, wc_ref, bc_ref,
                 yhat_ref, attn_ref, *, inv_seq_len):
    # ids_ref:   (TB, Sp)  int32  token ids (S/B padding uses the zero "pad token" id)
    # mask_ref:  (TB, Sp)  f32    1.0 = keep, 0.0 = masked (padded S positions are 0)
    # table_ref: (Vp, Ep)  f32    embedding table, zero-padded (row V.. are zero)
    # wq_ref:    (Ep, Ep)  f32    q_linear weight, pre-transposed & zero-padded
    # bq_ref:    (1, Ep)   f32    q_linear bias (zero-padded)
    # wc_ref:    (Ep, Cp)  f32    folded emb_linear->linear weight (We^T @ W^T)
    # bc_ref:    (1, Cp)   f32    folded bias (be @ W^T + b)
    # yhat_ref:  (TB, Cp)  f32    logits (padded lanes are 0)
    # attn_ref:  (TB, Sp)  f32    attention weights
    TB, Sp = ids_ref.shape
    Vp, Ep = table_ref.shape

    # ---- in-kernel embedding gather: one-hot matmul on the MXU (table is VMEM-resident)
    ids = ids_ref[...]                                                       # (TB, Sp) i32
    vocab_iota = jax.lax.broadcasted_iota(jnp.int32, (TB, Sp, Vp), 2)
    one_hot = (ids[:, :, None] == vocab_iota).astype(jnp.float32)            # (TB, Sp, Vp)
    emb = jnp.dot(one_hot.reshape(TB * Sp, Vp), table_ref[...],
                  preferred_element_type=jnp.float32)                        # (TB*Sp, Ep)
    emb = emb.reshape(TB, Sp, Ep)

    # mean over the ORIGINAL sequence length (padded S positions hit the zero pad-token
    # row of the table, so the sum is unchanged)
    mean_emb = jnp.sum(emb, axis=1) * inv_seq_len                            # (TB, Ep)

    # q projection on the MXU
    q = jnp.dot(mean_emb, wq_ref[...],
                preferred_element_type=jnp.float32) + bq_ref[...]            # (TB, Ep)

    # attention scores: broadcast multiply + lane reduction over E
    scores = jnp.sum(q[:, None, :] * emb, axis=2)                            # (TB, Sp)
    scores = jnp.where(mask_ref[...] > 0.0, scores, jnp.float32(-jnp.inf))

    # masked softmax over the sequence axis (all-masked row -> NaN, same as torch)
    m = jnp.max(scores, axis=1, keepdims=True)
    p = jnp.exp(scores - m)
    denom = jnp.sum(p, axis=1, keepdims=True)
    att = p / denom
    attn_ref[...] = att

    # attention-weighted pooling, then the folded (emb_linear -> linear) projection
    wsum = jnp.sum(att[:, :, None] * emb, axis=1)                            # (TB, Ep)
    yhat_ref[...] = jnp.dot(wsum, wc_ref[...],
                            preferred_element_type=jnp.float32) + bc_ref[...]


def attention_modelv2_forward(x_idx, x_lengths, mask, embeddings, wq, bq, we, be, w, b):
    """x_idx: (S, B) int32 token ids; x_lengths: (B,) (unused by the torch forward, kept
    for signature fidelity); mask: (B, S) bool (True = keep); embeddings: (V, E) f32;
    wq/we: (E, E), bq/be: (E,), w: (C, E), b: (C,)  — torch Linear layouts.
    Returns (yhat (B, C), attention (B, S))."""
    del x_lengths  # the original torch forward never uses it
    S, B = x_idx.shape
    V, E = embeddings.shape
    C = b.shape[0]

    Ep = _round_up(E, 128)       # lane-dense hidden dim (resident weights only)
    Cp = _round_up(C, 128)       # lane-dense logits dim
    Sp = _round_up(S, 8)         # sublane-aligned sequence dim
    Vp = _round_up(V + 1, 128)   # vocab + zero "pad token" row, lane-aligned for the MXU

    # ---- batch tiling: ALWAYS pad B up to a multiple of TB (no single-huge-block path)
    TB = 8
    if B > 16:
        TB = min(256, _round_up(B // 2, 8))      # >=2 tiles so v7x megacore shards the grid
    # cap the per-tile one-hot/emb intermediate footprint (~<= 8 MiB, safe on v7x 64 MiB VMEM)
    vmem_budget = 8 * 1024 * 1024
    tb_cap = max(8, (vmem_budget // (Sp * Vp * 4)) // 8 * 8)
    TB = min(TB, tb_cap)
    Bp = _round_up(max(B, TB), TB)
    grid = (Bp // TB,)

    # ---- small resident operands: pad & fold once (plain JAX, runs once) ---------------
    # TODO(synk): for vocabularies too large for VMEM, keep an external jnp.take gather
    # (streamed, unpadded E) instead of the in-kernel one-hot matmul.
    pad_id = V                                                      # zero row in padded table
    table = jnp.zeros((Vp, Ep), jnp.float32).at[:V, :E].set(embeddings)

    ids = x_idx.T.astype(jnp.int32)                                 # (B, S)
    ids = jnp.pad(ids, ((0, Bp - B), (0, Sp - S)), constant_values=pad_id)

    mask_f = mask.astype(jnp.float32)                               # (B, S), 1 = keep
    mask_f = jnp.pad(mask_f, ((0, 0), (0, Sp - S)))                 # padded S positions masked
    mask_f = jnp.pad(mask_f, ((0, Bp - B), (0, 0)), constant_values=1.0)  # padded rows stay finite

    wq_t = jnp.zeros((Ep, Ep), jnp.float32).at[:E, :E].set(wq.T)
    bq_row = jnp.zeros((1, Ep), jnp.float32).at[0, :E].set(bq)

    # fold emb_linear and the final linear (exact: softmax weights sum to 1)
    wc = jnp.zeros((Ep, Cp), jnp.float32).at[:E, :C].set(we.T @ w.T)
    bc = jnp.zeros((1, Cp), jnp.float32).at[0, :C].set(be @ w.T + b)

    kernel = functools.partial(_attn_kernel, inv_seq_len=1.0 / float(S))

    yhat_pad, attn_pad = pl.pallas_call(
        kernel,
        out_shape=(jax.ShapeDtypeStruct((Bp, Cp), jnp.float32),
                   jax.ShapeDtypeStruct((Bp, Sp), jnp.float32)),
        grid=grid,
        in_specs=[
            pl.BlockSpec((TB, Sp), lambda i: (i, 0)),          # token ids
            pl.BlockSpec((TB, Sp), lambda i: (i, 0)),          # mask
            pl.BlockSpec((Vp, Ep), lambda i: (0, 0)),          # embedding table (resident)
            pl.BlockSpec((Ep, Ep), lambda i: (0, 0)),          # wq^T
            pl.BlockSpec((1, Ep), lambda i: (0, 0)),           # bq
            pl.BlockSpec((Ep, Cp), lambda i: (0, 0)),          # folded weight
            pl.BlockSpec((1, Cp), lambda i: (0, 0)),           # folded bias
        ],
        out_specs=(pl.BlockSpec((TB, Cp), lambda i: (i, 0)),
                   pl.BlockSpec((TB, Sp), lambda i: (i, 0))),
        compiler_params=pltpu.CompilerParams(
            dimension_semantics=("parallel",),
            vmem_limit_bytes=32 * 1024 * 1024),
    )(ids, mask_f, table, wq_t, bq_row, wc, bc)

    return yhat_pad[:B, :C], attn_pad[:B, :S]


if __name__ == "__main__":
    emb_size = 50
    nb_class = 2
    vocab = 100
    seq = 8
    batch = 2

    key = jax.random.PRNGKey(0)
    ks = jax.random.split(key, 8)

    # Frozen "pretrained" embedding table.
    embeddings = jax.random.normal(ks[0], (vocab, emb_size), dtype=jnp.float32)

    # nn.Linear default init: U(-1/sqrt(in), 1/sqrt(in)).
    bound = 1.0 / (emb_size ** 0.5)
    wq = jax.random.uniform(ks[1], (emb_size, emb_size), jnp.float32, -bound, bound)
    bq = jax.random.uniform(ks[2], (emb_size,), jnp.float32, -bound, bound)
    we = jax.random.uniform(ks[3], (emb_size, emb_size), jnp.float32, -bound, bound)
    be = jax.random.uniform(ks[4], (emb_size,), jnp.float32, -bound, bound)
    w = jax.random.uniform(ks[5], (nb_class, emb_size), jnp.float32, -bound, bound)
    b = jax.random.uniform(ks[6], (nb_class,), jnp.float32, -bound, bound)

    # Token indices are seq-major (S, B) like the PyTorch module; mask is (B, S).
    x_idx = jax.random.randint(ks[7], (seq, batch), 0, vocab, dtype=jnp.int32)
    lengths = jnp.array([seq, seq - 3], dtype=jnp.int32)
    x_lengths = lengths.astype(jnp.float32)
    mask = jnp.arange(seq)[None, :] < lengths[:, None]            # (B, S) bool, True = keep

    yhat, attention = attention_modelv2_forward(
        x_idx, x_lengths, mask, embeddings, wq, bq, we, be, w, b)
    yhat, attention = jax.block_until_ready((yhat, attention))

    # Pure-JAX reference mirroring the torch forward literally (no folding).
    embedded_ref = jnp.take(embeddings, x_idx, axis=0).transpose(1, 0, 2)    # (B, S, E)
    mean_ref = jnp.mean(embedded_ref, axis=1)
    q_ref = mean_ref @ wq.T + bq
    scores_ref = jnp.sum(q_ref[:, None, :] * embedded_ref, axis=2)
    scores_ref = jnp.where(mask, scores_ref, -jnp.inf)
    attn_ref = jax.nn.softmax(scores_ref, axis=1)
    rep_ref = (embedded_ref @ we.T + be) * attn_ref[:, :, None]
    yhat_ref = jnp.sum(rep_ref, axis=1) @ w.T + b

    assert yhat.shape == (batch, nb_class)
    assert attention.shape == (batch, seq)
    assert jnp.allclose(attention, attn_ref, atol=1e-5, rtol=1e-5)
    assert jnp.allclose(yhat, yhat_ref, atol=1e-4, rtol=1e-4)

    print("KERNEL_OK")
</pallas_src>

<mosaic_0001>
module attributes {stable_mosaic.version = 11 : i64} {
  func.func @_attn_kernel(%arg0: i32, %arg1: memref<8x8xi32, #tpu.memory_space<vmem>>, %arg2: memref<8x8xf32, #tpu.memory_space<vmem>>, %arg3: memref<128x128xf32, #tpu.memory_space<vmem>>, %arg4: memref<128x128xf32, #tpu.memory_space<vmem>>, %arg5: memref<1x128xf32, #tpu.memory_space<vmem>>, %arg6: memref<128x128xf32, #tpu.memory_space<vmem>>, %arg7: memref<1x128xf32, #tpu.memory_space<vmem>>, %arg8: memref<8x128xf32, #tpu.memory_space<vmem>>, %arg9: memref<8x8xf32, #tpu.memory_space<vmem>>) attributes {dimension_semantics = [#tpu.dimension_semantics<parallel>], iteration_bounds = array<i64: 1>, scalar_prefetch = 0 : i64, scratch_operands = 0 : i64, tpu.core_type = #tpu.core_type<tc>, window_params = [{transform_indices = @transform_0, window_bounds = array<i64: 8, 8>}, {transform_indices = @transform_1, window_bounds = array<i64: 8, 8>}, {pipeline_mode = #tpu.pipeline_mode<synchronous>, transform_indices = @transform_2, window_bounds = array<i64: 128, 128>}, {pipeline_mode = #tpu.pipeline_mode<synchronous>, transform_indices = @transform_3, window_bounds = array<i64: 128, 128>}, {pipeline_mode = #tpu.pipeline_mode<synchronous>, transform_indices = @transform_4, window_bounds = array<i64: 1, 128>}, {pipeline_mode = #tpu.pipeline_mode<synchronous>, transform_indices = @transform_5, window_bounds = array<i64: 128, 128>}, {pipeline_mode = #tpu.pipeline_mode<synchronous>, transform_indices = @transform_6, window_bounds = array<i64: 1, 128>}, {transform_indices = @transform_7, window_bounds = array<i64: 8, 128>}, {transform_indices = @transform_8, window_bounds = array<i64: 8, 8>}]} {
    %c0 = arith.constant 0 : index
    %c0_0 = arith.constant 0 : index
    %0 = vector.load %arg1[%c0, %c0_0] : memref<8x8xi32, #tpu.memory_space<vmem>>, vector<8x8xi32>
    %1 = tpu.iota {dimensions = array<i32: 2>} : vector<8x8x128xi32>
    %2 = vector.shape_cast %0 : vector<8x8xi32> to vector<8x8x1xi32>
    %3 = vector.broadcast %2 : vector<8x8x1xi32> to vector<8x8x128xi32>
    %4 = arith.cmpi eq, %3, %1 : vector<8x8x128xi32>
    %5 = arith.extui %4 : vector<8x8x128xi1> to vector<8x8x128xi32>
    %6 = arith.sitofp %5 : vector<8x8x128xi32> to vector<8x8x128xf32>
    %7 = vector.shape_cast %6 : vector<8x8x128xf32> to vector<64x128xf32>
    %c0_1 = arith.constant 0 : index
    %c0_2 = arith.constant 0 : index
    %8 = vector.load %arg3[%c0_1, %c0_2] : memref<128x128xf32, #tpu.memory_space<vmem>>, vector<128x128xf32>
    %cst = arith.constant dense<0.000000e+00> : vector<64x128xf32>
    %9 = tpu.matmul %7, %8, %cst {dimension_numbers = #tpu.dot_dimension_numbers<[1], [0], [0], [1], [0, 0, 1, 1], [], []>} : vector<64x128xf32>, vector<128x128xf32>, vector<64x128xf32> -> vector<64x128xf32>
    %10 = vector.shape_cast %9 : vector<64x128xf32> to vector<8x8x128xf32>
    %cst_3 = arith.constant dense<0.000000e+00> : vector<8x128xf32>
    %11 = vector.multi_reduction <add>, %10, %cst_3 [1] : vector<8x8x128xf32> to vector<8x128xf32>
    %cst_4 = arith.constant 1.250000e-01 : f32
    %12 = vector.broadcast %cst_4 : f32 to vector<8x128xf32>
    %13 = arith.mulf %11, %12 : vector<8x128xf32>
    %c0_5 = arith.constant 0 : index
    %c0_6 = arith.constant 0 : index
    %14 = vector.load %arg4[%c0_5, %c0_6] : memref<128x128xf32, #tpu.memory_space<vmem>>, vector<128x128xf32>
    %cst_7 = arith.constant dense<0.000000e+00> : vector<8x128xf32>
    %15 = tpu.matmul %13, %14, %cst_7 {dimension_numbers = #tpu.dot_dimension_numbers<[1], [0], [0], [1], [0, 0, 1, 1], [], []>} : vector<8x128xf32>, vector<128x128xf32>, vector<8x128xf32> -> vector<8x128xf32>
    %c0_8 = arith.constant 0 : index
    %c0_9 = arith.constant 0 : index
    %16 = vector.load %arg5[%c0_8, %c0_9] : memref<1x128xf32, #tpu.memory_space<vmem>>, vector<1x128xf32>
    %17 = vector.broadcast %16 : vector<1x128xf32> to vector<8x128xf32>
    %18 = arith.addf %15, %17 : vector<8x128xf32>
    %19 = vector.shape_cast %18 : vector<8x128xf32> to vector<8x1x128xf32>
    %20 = vector.broadcast %19 : vector<8x1x128xf32> to vector<8x8x128xf32>
    %21 = arith.mulf %20, %10 : vector<8x8x128xf32>
    %cst_10 = arith.constant dense<0.000000e+00> : vector<8x8xf32>
    %22 = vector.multi_reduction <add>, %21, %cst_10 [2] : vector<8x8x128xf32> to vector<8x8xf32>
    %c0_11 = arith.constant 0 : index
    %c0_12 = arith.constant 0 : index
    %23 = vector.load %arg2[%c0_11, %c0_12] : memref<8x8xf32, #tpu.memory_space<vmem>>, vector<8x8xf32>
    %cst_13 = arith.constant 0.000000e+00 : f32
    %24 = vector.broadcast %cst_13 : f32 to vector<8x8xf32>
    %25 = arith.cmpf ogt, %23, %24 : vector<8x8xf32>
    %cst_14 = arith.constant 0xFF800000 : f32
    %26 = vector.broadcast %cst_14 : f32 to vector<8x8xf32>
    %27 = arith.select %25, %22, %26 : vector<8x8xi1>, vector<8x8xf32>
    %cst_15 = arith.constant dense<0xFF800000> : vector<8xf32>
    %28 = vector.multi_reduction <maximumf>, %27, %cst_15 [1] : vector<8x8xf32> to vector<8xf32>
    %29 = vector.shape_cast %28 : vector<8xf32> to vector<8x1xf32>
    %30 = vector.broadcast %29 : vector<8x1xf32> to vector<8x8xf32>
    %31 = arith.subf %27, %30 : vector<8x8xf32>
    %32 = math.exp %31 : vector<8x8xf32>
    %cst_16 = arith.constant dense<0.000000e+00> : vector<8xf32>
    %33 = vector.multi_reduction <add>, %32, %cst_16 [1] : vector<8x8xf32> to vector<8xf32>
    %34 = vector.shape_cast %33 : vector<8xf32> to vector<8x1xf32>
    %35 = vector.broadcast %34 : vector<8x1xf32> to vector<8x8xf32>
    %36 = arith.divf %32, %35 : vector<8x8xf32>
    %c0_17 = arith.constant 0 : index
    %c0_18 = arith.constant 0 : index
    %37 = vector.load %arg9[%c0_17, %c0_18] : memref<8x8xf32, #tpu.memory_space<vmem>>, vector<8x8xf32>
    tpu.vector_store %arg9[%c0_17, %c0_18], %36 {strides = array<i32>} : memref<8x8xf32, #tpu.memory_space<vmem>>, vector<8x8xf32>,
    %38 = vector.shape_cast %36 : vector<8x8xf32> to vector<8x8x1xf32>
    %39 = vector.broadcast %38 : vector<8x8x1xf32> to vector<8x8x128xf32>
    %40 = arith.mulf %39, %10 : vector<8x8x128xf32>
    %cst_19 = arith.constant dense<0.000000e+00> : vector<8x128xf32>
    %41 = vector.multi_reduction <add>, %40, %cst_19 [1] : vector<8x8x128xf32> to vector<8x128xf32>
    %c0_20 = arith.constant 0 : index
    %c0_21 = arith.constant 0 : index
    %42 = vector.load %arg6[%c0_20, %c0_21] : memref<128x128xf32, #tpu.memory_space<vmem>>, vector<128x128xf32>
    %cst_22 = arith.constant dense<0.000000e+00> : vector<8x128xf32>
    %43 = tpu.matmul %41, %42, %cst_22 {dimension_numbers = #tpu.dot_dimension_numbers<[1], [0], [0], [1], [0, 0, 1, 1], [], []>} : vector<8x128xf32>, vector<128x128xf32>, vector<8x128xf32> -> vector<8x128xf32>
    %c0_23 = arith.constant 0 : index
    %c0_24 = arith.constant 0 : index
    %44 = vector.load %arg7[%c0_23, %c0_24] : memref<1x128xf32, #tpu.memory_space<vmem>>, vector<1x128xf32>
    %45 = vector.broadcast %44 : vector<1x128xf32> to vector<8x128xf32>
    %46 = arith.addf %43, %45 : vector<8x128xf32>
    %c0_25 = arith.constant 0 : index
    %c0_26 = arith.constant 0 : index
    %47 = vector.load %arg8[%c0_25, %c0_26] : memref<8x128xf32, #tpu.memory_space<vmem>>, vector<8x128xf32>
    tpu.vector_store %arg8[%c0_25, %c0_26], %46 {strides = array<i32>} : memref<8x128xf32, #tpu.memory_space<vmem>>, vector<8x128xf32>,
    return
  }
  func.func @transform_0(%arg0: i32) -> (i32, i32) {
    %c0_i32 = arith.constant 0 : i32
    %c0_i32_0 = arith.constant 0 : i32
    return %arg0, %c0_i32 : i32, i32
  }
  func.func @transform_1(%arg0: i32) -> (i32, i32) {
    %c0_i32 = arith.constant 0 : i32
    %c0_i32_0 = arith.constant 0 : i32
    return %arg0, %c0_i32 : i32, i32
  }
  func.func @transform_2(%arg0: i32) -> (i32, i32) {
    %c0_i32 = arith.constant 0 : i32
    %c0_i32_0 = arith.constant 0 : i32
    %c0_i32_1 = arith.constant 0 : i32
    return %c0_i32, %c0_i32_0 : i32, i32
  }
  func.func @transform_3(%arg0: i32) -> (i32, i32) {
    %c0_i32 = arith.constant 0 : i32
    %c0_i32_0 = arith.constant 0 : i32
    %c0_i32_1 = arith.constant 0 : i32
    return %c0_i32, %c0_i32_0 : i32, i32
  }
  func.func @transform_4(%arg0: i32) -> (i32, i32) {
    %c0_i32 = arith.constant 0 : i32
    %c0_i32_0 = arith.constant 0 : i32
    %c0_i32_1 = arith.constant 0 : i32
    return %c0_i32, %c0_i32_0 : i32, i32
  }
  func.func @transform_5(%arg0: i32) -> (i32, i32) {
    %c0_i32 = arith.constant 0 : i32
    %c0_i32_0 = arith.constant 0 : i32
    %c0_i32_1 = arith.constant 0 : i32
    return %c0_i32, %c0_i32_0 : i32, i32
  }
  func.func @transform_6(%arg0: i32) -> (i32, i32) {
    %c0_i32 = arith.constant 0 : i32
    %c0_i32_0 = arith.constant 0 : i32
    %c0_i32_1 = arith.constant 0 : i32
    return %c0_i32, %c0_i32_0 : i32, i32
  }
  func.func @transform_7(%arg0: i32) -> (i32, i32) {
    %c0_i32 = arith.constant 0 : i32
    %c0_i32_0 = arith.constant 0 : i32
    return %arg0, %c0_i32 : i32, i32
  }
  func.func @transform_8(%arg0: i32) -> (i32, i32) {
    %c0_i32 = arith.constant 0 : i32
    %c0_i32_0 = arith.constant 0 : i32
    return %arg0, %c0_i32 : i32, i32
  }
}

</mosaic_0001>

<bundles_post_ra>
// kernel: tpu_custom_call.1
= control target key start
LH: loop header
LB: loop body
LE: loop exit
PB: predicated region body
PF: predicated region fallthrough
CT: control target
= control target key end

     0   :  { %14 = vsyncpa [#allocation3], 0  ;;  %s1071_s0 = inlined_call_operand.hbm [shape: s32[8,8], index: 0, kind: input, shape index: {}]   ;;  %s1072_s1 = inlined_call_operand.hbm [shape: f32[8,8], index: 1, kind: input, shape index: {}]   ;;  %s1073_s2 = inlined_call_operand.hbm [shape: f32[128,128], index: 2, kind: input, shape index: {}]   ;;  %s1074_s3 = inlined_call_operand.hbm [shape: f32[128,128], index: 3, kind: input, shape index: {}]   ;;  %s1075_s4 = inlined_call_operand.vmem [shape: f32[1,128], index: 4, kind: input, shape index: {}]   ;;  %s1076_s5 = inlined_call_operand.hbm [shape: f32[128,128], index: 5, kind: input, shape index: {}]   ;;  %s1077_s6 = inlined_call_operand.vmem [shape: f32[1,128], index: 6, kind: input, shape index: {}]   ;;  %s1078_s7 = inlined_call_operand.hbm [shape: f32[8,128], index: 7, kind: output, shape index: {0}]   ;;  %s1079_s8 = inlined_call_operand.hbm [shape: f32[8,8], index: 8, kind: output, shape index: {1}]  }
   0x1   :  { %15 = vsyncpa [#allocation6], 0 }
   0x2   :  { %16 = vsyncpa [#allocation9], 0 }
   0x3   :  { %17 = vsyncpa [#allocation4], 0  ;;  %s35_s29 = sshll.u32 %s1072_s1, 4  ;;  %s36_s29 = int_to_ptr.hbm [resolvable:$true] %s35_s29 }
   0x4   :  { %18 = vsyncpa [#allocation13], 0  ;;  %s897_s30 = smov [#allocation5]   ;;  %s58_s12 = sshll.u32 %s1074_s3, 4  ;;  %s59_s12 = int_to_ptr.hbm [resolvable:$true] %s58_s12 }
   0x5   :  { %s37_s9 = sshll.u32 %s897_s30, 4  ;;  %s898_s13 = smov [#allocation8]   ;;  %s38_s9 = int_to_ptr.vmem [resolvable:$true] %s37_s9 }
   0x6   :  { %40 = dma.hbm_to_vmem [thread:$0]  %s36_s29, 128, %s38_s9, [#allocation6]  }
   0x7   :  { %s60_s14 = sshll.u32 %s898_s13, 4  ;;  %s24_s17 = sshll.u32 %s1071_s0, 4  ;;  %s61_s14 = int_to_ptr.vmem [resolvable:$true] %s60_s14  ;;  %s25_s17 = int_to_ptr.hbm [resolvable:$true] %s24_s17 }
   0x8   :  { %s899_s1 = smov 128   ;;  %s900_s18 = smov 8  }
   0x9   :  { %66 = dma.hbm_to_vmem [thread:$0]  %s59_s12, 2048, %s61_s14, [#allocation9], %s899_s1, %s899_s1, %s900_s18  }
   0xa   :  { %s45_s21 = sshll.u32 %s1073_s2, 4  ;;  %s901_s22 = smov [#allocation2]   ;;  %s46_s21 = int_to_ptr.hbm [resolvable:$true] %s45_s21 }
   0xb   :  { %s26_s23 = sshll.u32 %s901_s22, 4  ;;  %s902_s3 = smov [#allocation7]   ;;  %s27_s23 = int_to_ptr.vmem [resolvable:$true] %s26_s23 }
   0xc   :  { %29 = dma.hbm_to_vmem [thread:$0]  %s25_s17, 128, %s27_s23, [#allocation3]  }
   0xd   :  { %s47_s24 = sshll.u32 %s902_s3, 4  ;;  %s73_s0 = sshll.u32 %s1076_s5, 4  ;;  %s48_s24 = int_to_ptr.vmem [resolvable:$true] %s47_s24  ;;  %s74_s0 = int_to_ptr.hbm [resolvable:$true] %s73_s0 }
   0xe   :  { %53 = dma.hbm_to_vmem [thread:$0]  %s46_s21, 2048, %s48_s24, [#allocation6], %s899_s1, %s899_s1, %s900_s18  }
   0xf   :  { %s903_s27 = smov [#allocation10]  }
  0x10   :  { %s75_s28 = sshll.u32 %s903_s27, 4  ;;  %s76_s28 = int_to_ptr.vmem [resolvable:$true] %s75_s28 }
  0x11   :  { %81 = dma.hbm_to_vmem [thread:$0]  %s74_s0, 2048, %s76_s28, [#allocation9], %s899_s1, %s899_s1, %s900_s18  }
  0x12   :  { %887 = dma.done.wait [#allocation3], 128  }
  0x13   :  { %888 = vsyncadd [#allocation3], 4294967168 }
  0x14   :  { %889 = dma.done.wait [#allocation6], 2176  }
  0x15   :  { %890 = vsyncadd [#allocation6], 4294965120 }
  0x16   :  { %891 = dma.done.wait [#allocation9], 4096  }
  0x17   :  { %892 = vsyncadd [#allocation9], 4294963200  ;;  %v105_v0 = vlaneseq  ;;  %v104_v2 = vld [vmem:[#allocation2] sm:$0xff]  ;;  %v202_v3 = vld [vmem:[#allocation7 + $0x78] sm:$0xff]  ;;  %v904_v30 = vmov 1.0   ;;  %vm328_vm8 = vcmask 1041409  }
  0x18   :  { %v201_v4 = vld [vmem:[#allocation7 + $0x70] sm:$0xff]  ;;  %v142_v5 = vperm.slane %v104_v2, 5  ;;  %v128_v6 = vperm.slane %v104_v2, 3  ;;  %684 = vmatpush.msra.mxu3 %v202_v3  ;;  %203 = vmatpush.msra.mxu0 %v202_v3  ;;  %v149_v7 = vperm.slane %v104_v2, 6  ;;  %v200_v8 = vld [vmem:[#allocation7 + $0x68] sm:$0xff]  ;;  %v199_v9 = vld [vmem:[#allocation7 + $0x60] sm:$0xff] }
  0x19   :  { %v109_v1 = vshrl.u32 %v105_v0, 7  ;;  %v198_v10 = vld [vmem:[#allocation7 + $0x58] sm:$0xff]  ;;  %v135_v11 = vperm.slane %v104_v2, 4  ;;  %v107_v12 = vperm.slane %v104_v2, 0  ;;  %v197_v13 = vld [vmem:[#allocation7 + $0x50] sm:$0xff]  ;;  %v114_v14 = vperm.slane %v104_v2, 1 }
  0x1a   :  { %685 = vmatpush.msra.mxu3 %v201_v4  ;;  %204 = vmatpush.msra.mxu0 %v201_v4  ;;  %v196_v15 = vld [vmem:[#allocation7 + $0x48] sm:$0xff]  ;;  %v195_v16 = vld [vmem:[#allocation7 + $0x40] sm:$0xff]  ;;  %v194_v17 = vld [vmem:[#allocation7 + $0x38] sm:$0xff]  ;;  %v156_v18 = vperm.slane %v104_v2, 7  ;;  %v121_v19 = vperm.slane %v104_v2, 2  ;;  %v969_v27 = vand.u32 127, %v105_v0 }
  0x1b   :  { %711 = vset.pattern.permute.xlu1 %v109_v1  ;;  %710 = vset.pattern.permute.xlu0 %v109_v1  ;;  %v193_v20 = vld [vmem:[#allocation7 + $0x30] sm:$0xff]  ;;  %v192_v21 = vld [vmem:[#allocation7 + $0x28] sm:$0xff]  ;;  %v191_v22 = vld [vmem:[#allocation7 + $0x20] sm:$0xff]  ;;  %vm330_vm9 = vcmask 1042434   ;;  %vm332_vm10 = vcmask 1043459   ;;  %vm334_vm11 = vcmask 1044484  }
  0x1c   :  { %712 = vset.pattern.permute.xlu2 %v109_v1  ;;  %686 = vmatpush.msra.mxu3 %v200_v8  ;;  %v190_v23 = vld [vmem:[#allocation7 + $0x18] sm:$0xff]  ;;  %v189_v24 = vld [vmem:[#allocation7 + $0x10] sm:$0xff]  ;;  %v188_v25 = vld [vmem:[#allocation7 + $0x8] sm:$0xff]  ;;  %vm336_vm12 = vcmask 1045509   ;;  %vm338_vm13 = vcmask 1046534   ;;  %vm340_vm14 = vcmask 1047559  }
  0x1d   :  { %205 = vmatpush.msra.mxu0 %v200_v8  ;;  %v187_v26 = vld [vmem:[#allocation7] sm:$0xff]  ;;  %v315_v37 = vld [vmem:[#allocation8 + $0x78] sm:$0xff]  ;;  %v314_v38 = vld [vmem:[#allocation8 + $0x70] sm:$0xff]  ;;  %s651_s10 = sshll.u32 %s1079_s8, 4  ;;  %s906_s13 = smov [#allocation11]   ;;  %s652_s10 = int_to_ptr.hbm [resolvable:$true] %s651_s10 }
  0x1e   :  { %687 = vmatpush.msra.mxu3 %v199_v9  ;;  %343 = vmatpush.msra.mxu1 %v315_v37  ;;  %v313_v39 = vld [vmem:[#allocation8 + $0x68] sm:$0xff]  ;;  %v312_v40 = vld [vmem:[#allocation8 + $0x60] sm:$0xff]  ;;  %v311_v41 = vld [vmem:[#allocation8 + $0x58] sm:$0xff]  ;;  %s638_s14 = sshll.u32 %s906_s13, 4  ;;  %s640_s17 = sshll.u32 %s1078_s7, 4  ;;  %s639_s14 = int_to_ptr.vmem [resolvable:$true] %s638_s14  ;;  %s641_s17 = int_to_ptr.hbm [resolvable:$true] %s640_s17 }
  0x1f   :  { %206 = vmatpush.msra.mxu0 %v199_v9  ;;  %v310_v42 = vld [vmem:[#allocation8 + $0x50] sm:$0xff]  ;;  %v309_v43 = vld [vmem:[#allocation8 + $0x48] sm:$0xff]  ;;  %v308_v44 = vld [vmem:[#allocation8 + $0x40] sm:$0xff] }
  0x20   :  { %688 = vmatpush.msra.mxu3 %v198_v10  ;;  %344 = vmatpush.msra.mxu1 %v314_v38  ;;  %v307_v46 = vld [vmem:[#allocation8 + $0x38] sm:$0xff]  ;;  %v306_v48 = vld [vmem:[#allocation8 + $0x30] sm:$0xff]  ;;  %v305_v49 = vld [vmem:[#allocation8 + $0x28] sm:$0xff] }
  0x21   :  { %207 = vmatpush.msra.mxu0 %v198_v10  ;;  %v304_v50 = vld [vmem:[#allocation8 + $0x20] sm:$0xff]  ;;  %v303_v51 = vld [vmem:[#allocation8 + $0x18] sm:$0xff]  ;;  %v302_v53 = vld [vmem:[#allocation8 + $0x10] sm:$0xff] }
  0x22   :  { %689 = vmatpush.msra.mxu3 %v197_v13  ;;  %345 = vmatpush.msra.mxu1 %v313_v39  ;;  %v301_v56 = vld [vmem:[#allocation8 + $0x8] sm:$0xff]  ;;  %v300_v58 = vld [vmem:[#allocation8] sm:$0xff] }
  0x23   :  { %147 = vperm.xlu1 %711, %v142_v5   ;;  %133 = vperm.xlu0 %710, %v128_v6  }
  0x24   :  { %154 = vperm.xlu2 %712, %v149_v7   ;;  %690 = vmatpush.msra.mxu3 %v196_v15 }
  0x25   :  { %208 = vmatpush.msra.mxu0 %v197_v13  ;;  %346 = vmatpush.msra.mxu1 %v312_v40 }
  0x26   :  { %691 = vmatpush.msra.mxu3 %v195_v16 }
  0x27   :  { %209 = vmatpush.msra.mxu0 %v196_v15  ;;  %347 = vmatpush.msra.mxu1 %v311_v41 }
  0x28   :  { %692 = vmatpush.msra.mxu3 %v194_v17 }
  0x29   :  { %210 = vmatpush.msra.mxu0 %v195_v16  ;;  %348 = vmatpush.msra.mxu1 %v310_v42 }
  0x2a   :  { %693 = vmatpush.msra.mxu3 %v193_v20 }
  0x2b   :  { %140 = vperm.xlu0 %710, %v135_v11   ;;  %112 = vperm.xlu1 %711, %v107_v12  }
  0x2c   :  { %119 = vperm.xlu2 %712, %v114_v14   ;;  %694 = vmatpush.msra.mxu3 %v192_v21 }
  0x2d   :  { %211 = vmatpush.msra.mxu0 %v194_v17  ;;  %349 = vmatpush.msra.mxu1 %v309_v43 }
  0x2e   :  { %695 = vmatpush.msra.mxu3 %v191_v22 }
  0x2f   :  { %212 = vmatpush.msra.mxu0 %v193_v20  ;;  %350 = vmatpush.msra.mxu1 %v308_v44 }
  0x30   :  { %696 = vmatpush.msra.mxu3 %v190_v23 }
  0x31   :  { %213 = vmatpush.msra.mxu0 %v192_v21  ;;  %351 = vmatpush.msra.mxu1 %v307_v46 }
  0x32   :  { %697 = vmatpush.msra.mxu3 %v189_v24 }
  0x33   :  { %161 = vperm.xlu0 %710, %v156_v18   ;;  %126 = vperm.xlu1 %711, %v121_v19  }
  0x34   :  { %214 = vmatpush.msra.mxu0 %v191_v22  ;;  %698 = vmatpush.msra.mxu3 %v188_v25 }
  0x35   :  { %352 = vmatpush.msra.mxu1 %v306_v48 }
  0x36   :  { %215 = vmatpush.msra.mxu0 %v190_v23  ;;  %699 = vmatpush.msra.mxu3 %v187_v26 }
  0x37   :  { %353 = vmatpush.msra.mxu1 %v305_v49 }
  0x38   :  { %216 = vmatpush.msra.mxu0 %v189_v24 }
  0x39   :  { %354 = vmatpush.msra.mxu1 %v304_v50 }
  0x3a   :  { %217 = vmatpush.msra.mxu0 %v188_v25 }
  0x3b   :  { %355 = vmatpush.msra.mxu1 %v303_v51 }
  0x3c   :  { %218 = vmatpush.msra.mxu0 %v187_v26 }
  0x3d   :  { %356 = vmatpush.msra.mxu1 %v302_v53 }
  0x3f   :  { %357 = vmatpush.msra.mxu1 %v301_v56 }
  0x41   :  { %358 = vmatpush.msra.mxu1 %v300_v58 }
  0x7e   :  { %v155_v31 = vpop.permute.xlu2 %154 }
  0x7f   :  { %vm169_vm5 = vcmp.eq.s32.totalorder %v155_v31, %v969_v27 }
  0x86   :  { %v120_v34 = vpop.permute.xlu2 %119 }
  0x87   :  { %vm164_vm3 = vcmp.eq.s32.totalorder %v120_v34, %v969_v27 }
  0x95   :  { %v148_v28 = vpop.permute.xlu1 %147  ;;  %v134_v29 = vpop.permute.xlu0 %133 }
  0x96   :  { %vm166_vm0 = vcmp.eq.s32.totalorder %v134_v29, %v969_v27  ;;  %vm168_vm4 = vcmp.eq.s32.totalorder %v148_v28, %v969_v27 }
  0x97   :  { %679 = vmatmul.msk.f32.vlgmr.msra.gmra.mxu3 %vm166_vm0, %v904_v30  ;;  %vm438_vm0 = vcmask 64512  }
  0x9d   :  { %v141_v32 = vpop.permute.xlu0 %140  ;;  %v113_v33 = vpop.permute.xlu1 %112 }
  0x9e   :  { %vm167_vm1 = vcmp.eq.s32.totalorder %v141_v32, %v969_v27  ;;  %vm163_vm2 = vcmp.eq.s32.totalorder %v113_v33, %v969_v27 }
  0x9f   :  { %676 = vmatmul.msk.f32.vlgmr.msra.gmra.mxu0 %vm163_vm2, %v904_v30  ;;  %680 = vmatmul.msk.f32.gmra.mxu3 %vm167_vm1, %v904_v30 }
  0xa5   :  { %v127_v35 = vpop.permute.xlu1 %126  ;;  %v162_v36 = vpop.permute.xlu0 %161 }
  0xa6   :  { %vm165_vm6 = vcmp.eq.s32.totalorder %v127_v35, %v969_v27  ;;  %vm170_vm7 = vcmp.eq.s32.totalorder %v162_v36, %v969_v27 }
  0xa7   :  { %677 = vmatmul.msk.f32.gmra.mxu0 %vm164_vm3, %v904_v30  ;;  %681 = vmatmul.msk.f32.gmra.mxu3 %vm168_vm4, %v904_v30 }
  0xaf   :  { %678 = vmatmul.msk.f32.gmra.mxu0 %vm165_vm6, %v904_v30  ;;  %682 = vmatmul.msk.f32.gmra.mxu3 %vm169_vm5, %v904_v30 }
  0xb7   :  { %683 = vmatmul.msk.f32.gmra.mxu3 %vm170_vm7, %v904_v30 }
 0x11a   :  { %v979_v45 = vpop.f32.mrf.mxu3 }
 0x11b   :  { %v262_v59 = vrot.slane %v979_v45, 4 }
 0x11c   :  { %v981_v47 = vpop.f32.mrf.mxu0 }
 0x11d   :  { %v244_v54 = vrot.slane %v981_v47, 4  ;;  %v263_v1 = vadd.f32 %v262_v59, %v979_v45 }
 0x11f   :  { %v245_v60 = vadd.f32 %v244_v54, %v981_v47  ;;  %v264_v8 = vrot.slane %v263_v1, 2 }
 0x121   :  { %v246_v2 = vrot.slane %v245_v60, 2  ;;  %v265_v16 = vadd.f32 %v264_v8, %v263_v1 }
 0x122   :  { %v983_v52 = vpop.f32.mrf.mxu3 }
 0x123   :  { %v268_v63 = vrot.slane %v983_v52, 4  ;;  %v247_v9 = vadd.f32 %v246_v2, %v245_v60  ;;  %v266_v25 = vrot.slane %v265_v16, 1  ;;  %v713_v2 = vld [vmem:[%s1075_s4] ss:$0 sm:$0xff]  ;;  %s905_s4 = smov [#allocation12]  }
 0x124   :  { %v986_v55 = vpop.f32.mrf.mxu0  ;;  %s649_s29 = sshll.u32 %s905_s4, 4  ;;  %s650_s29 = int_to_ptr.vmem [resolvable:$true] %s649_s29 }
 0x125   :  { %v250_v57 = vrot.slane %v986_v55, 4  ;;  %v269_v7 = vadd.f32 %v268_v63, %v983_v52  ;;  %v248_v17 = vrot.slane %v247_v9, 1  ;;  %v267_v36 = vadd.f32 %v266_v25, %v265_v16 }
 0x127   :  { %v251_v61 = vadd.f32 %v250_v57, %v986_v55  ;;  %v270_v14 = vrot.slane %v269_v7, 2  ;;  %v249_v26 = vadd.f32 %v248_v17, %v247_v9  ;;  %v295_v46 = vmul.f32 0.125, %v267_v36 }
 0x129   :  { %v252_v62 = vrot.slane %v251_v61, 2  ;;  %v271_v24 = vadd.f32 %v270_v14, %v269_v7  ;;  %v292_v37 = vmul.f32 0.125, %v249_v26 }
 0x12a   :  { %v993_v0 = vpop.f32.mrf.mxu3 }
 0x12b   :  { %v253_v4 = vadd.f32 %v252_v62, %v251_v61  ;;  %v274_v5 = vrot.slane %v993_v0, 4  ;;  %v272_v33 = vrot.slane %v271_v24, 1 }
 0x12c   :  { %v996_v3 = vpop.f32.mrf.mxu0 }
 0x12d   :  { %v256_v6 = vrot.slane %v996_v3, 4  ;;  %v254_v11 = vrot.slane %v253_v4, 1  ;;  %v275_v12 = vadd.f32 %v274_v5, %v993_v0  ;;  %v273_v43 = vadd.f32 %v272_v33, %v271_v24 }
 0x12f   :  { %v257_v10 = vadd.f32 %v256_v6, %v996_v3  ;;  %v255_v20 = vadd.f32 %v254_v11, %v253_v4  ;;  %v276_v21 = vrot.slane %v275_v12, 2  ;;  %v296_v54 = vmul.f32 0.125, %v273_v43 }
 0x131   :  { %v258_v13 = vrot.slane %v257_v10, 2  ;;  %v293_v30 = vmul.f32 0.125, %v255_v20  ;;  %v277_v31 = vadd.f32 %v276_v21, %v275_v12 }
 0x132   :  { %v1003_v15 = vpop.f32.mrf.mxu3 }
 0x133   :  { %v259_v18 = vadd.f32 %v258_v13, %v257_v10  ;;  %v280_v19 = vrot.slane %v1003_v15, 4  ;;  %v278_v40 = vrot.slane %v277_v31, 1  ;;  %v329_v42 = vsel %vm328_vm8, %v293_v30, %v292_v37 }
 0x135   :  { %v260_v22 = vrot.slane %v259_v18, 1  ;;  %v281_v23 = vadd.f32 %v280_v19, %v1003_v15  ;;  %v279_v50 = vadd.f32 %v278_v40, %v277_v31 }
 0x137   :  { %v261_v28 = vadd.f32 %v260_v22, %v259_v18  ;;  %v282_v29 = vrot.slane %v281_v23, 2  ;;  %v297_v60 = vmul.f32 0.125, %v279_v50 }
 0x139   :  { %v283_v32 = vadd.f32 %v282_v29, %v281_v23  ;;  %v294_v34 = vmul.f32 0.125, %v261_v28 }
 0x13a   :  { %v1007_v35 = vpop.f32.mrf.mxu3 }
 0x13b   :  { %v286_v38 = vrot.slane %v1007_v35, 4  ;;  %v284_v39 = vrot.slane %v283_v32, 1  ;;  %v331_v44 = vsel %vm330_vm9, %v294_v34, %v329_v42 }
 0x13c   :  { %v333_v53 = vsel %vm332_vm10, %v295_v46, %v331_v44 }
 0x13d   :  { %v287_v41 = vadd.f32 %v286_v38, %v1007_v35  ;;  %v285_v49 = vadd.f32 %v284_v39, %v283_v32  ;;  %v335_v58 = vsel %vm334_vm11, %v296_v54, %v333_v53 }
 0x13e   :  { %v337_v62 = vsel %vm336_vm12, %v297_v60, %v335_v58 }
 0x13f   :  { %v288_v48 = vrot.slane %v287_v41, 2  ;;  %v298_v57 = vmul.f32 0.125, %v285_v49 }
 0x141   :  { %v289_v51 = vadd.f32 %v288_v48, %v287_v41  ;;  %v339_v63 = vsel %vm338_vm13, %v298_v57, %v337_v62 }
 0x143   :  { %v290_v56 = vrot.slane %v289_v51, 1 }
 0x145   :  { %v291_v59 = vadd.f32 %v290_v56, %v289_v51  ;;  %v411_v51 = vld [vmem:[#allocation5] sm:$0xff] }
 0x146   :  { %vm412_vm15 = vcmp.gt.f32.partialorder %v411_v51, 0.0 }
 0x147   :  { %v299_v61 = vmul.f32 0.125, %v291_v59 }
 0x149   :  { %v341_v1 = vsel %vm340_vm14, %v299_v61, %v339_v63 }
 0x14a   :  { %359 = vmatmul.f32.vlgmr.msra.gmra.mxu1 %v341_v1 }
 0x1c7   :  { %v360_v4 = vpop.f32.mrf.mxu1 }
 0x1c8   :  { %v361_v5 = vadd.f32 %v713_v2, %v360_v4 }
 0x1ca   :  { %v371_v6 = vperm.slane %v361_v5, 0  ;;  %v365_v7 = vrot.slane %v361_v5, 2  ;;  %v364_v8 = vrot.slane %v361_v5, 1  ;;  %v366_v12 = vrot.slane %v361_v5, 3 }
 0x1cb   :  { %v369_v16 = vrot.slane %v361_v5, 6  ;;  %v368_v17 = vrot.slane %v361_v5, 5  ;;  %v367_v22 = vrot.slane %v361_v5, 4  ;;  %v370_v28 = vrot.slane %v361_v5, 7 }
 0x1cc   :  { %v387_v9 = vmul.f32 %v371_v6, %v981_v47  ;;  %v373_v10 = vperm.slane %v365_v7, 0  ;;  %v372_v11 = vperm.slane %v364_v8, 0  ;;  %v374_v18 = vperm.slane %v366_v12, 0 }
 0x1cd   :  { %v377_v19 = vperm.slane %v369_v16, 0  ;;  %v376_v20 = vperm.slane %v368_v17, 0  ;;  %v375_v25 = vperm.slane %v367_v22, 0  ;;  %v378_v29 = vperm.slane %v370_v28, 0  ;;  %v589_v28 = vld [vmem:[#allocation10 + $0x68] sm:$0xff] }
 0x1ce   :  { %395 = vadd.xlane.f32.xlu2 %v387_v9  ;;  %v389_v13 = vmul.f32 %v373_v10, %v996_v3  ;;  %v388_v14 = vmul.f32 %v372_v11, %v986_v55  ;;  %v390_v21 = vmul.f32 %v374_v18, %v979_v45 }
 0x1cf   :  { %v393_v23 = vmul.f32 %v377_v19, %v1003_v15  ;;  %v392_v24 = vmul.f32 %v376_v20, %v993_v0  ;;  %v391_v26 = vmul.f32 %v375_v25, %v983_v52  ;;  %v394_v30 = vmul.f32 %v378_v29, %v1007_v35  ;;  %v591_v25 = vld [vmem:[#allocation10 + $0x78] sm:$0xff]  ;;  %v588_v29 = vld [vmem:[#allocation10 + $0x60] sm:$0xff] }
 0x1d0   :  { %399 = vadd.xlane.f32.xlu1 %v389_v13  ;;  %397 = vadd.xlane.f32.xlu0 %v388_v14 }
 0x1d1   :  { %612 = vmatpush.msra.mxu2 %v591_v25 }
 0x1d6   :  { %401 = vadd.xlane.f32.xlu2 %v390_v21 }
 0x1d8   :  { %407 = vadd.xlane.f32.xlu1 %v393_v23  ;;  %405 = vadd.xlane.f32.xlu0 %v392_v24 }
 0x1de   :  { %403 = vadd.xlane.f32.xlu2 %v391_v26  ;;  %v590_v26 = vld [vmem:[#allocation10 + $0x70] sm:$0xff] }
 0x1df   :  { %613 = vmatpush.msra.mxu2 %v590_v26 }
 0x1e1   :  { %614 = vmatpush.msra.mxu2 %v589_v28 }
 0x1e3   :  { %615 = vmatpush.msra.mxu2 %v588_v29 }
 0x1e6   :  { %409 = vadd.xlane.f32.xlu2 %v394_v30  ;;  %v587_v30 = vld [vmem:[#allocation10 + $0x58] sm:$0xff] }
 0x1e7   :  { %616 = vmatpush.msra.mxu2 %v587_v30 }
 0x241   :  { %v396_v31 = vpop.xlane.xlu2 %395 }
 0x242   :  { %v421_v37 = vperm.slane %v396_v31, %v969_v27  ;;  %v586_v31 = vld [vmem:[#allocation10 + $0x50] sm:$0xff] }
 0x243   :  { %v398_v32 = vpop.xlane.xlu0 %397  ;;  %v400_v34 = vpop.xlane.xlu1 %399  ;;  %617 = vmatpush.msra.mxu2 %v586_v31 }
 0x244   :  { %v422_v36 = vperm.slane %v398_v32, %v969_v27  ;;  %v423_v38 = vperm.slane %v400_v34, %v969_v27  ;;  %v585_v32 = vld [vmem:[#allocation10 + $0x48] sm:$0xff]  ;;  %v584_v34 = vld [vmem:[#allocation10 + $0x40] sm:$0xff] }
 0x245   :  { %618 = vmatpush.msra.mxu2 %v585_v32 }
 0x246   :  { %v429_v39 = vsel %vm328_vm8, %v422_v36, %v421_v37  ;;  %v583_v36 = vld [vmem:[#allocation10 + $0x38] sm:$0xff]  ;;  %v582_v37 = vld [vmem:[#allocation10 + $0x30] sm:$0xff] }
 0x247   :  { %v430_v43 = vsel %vm330_vm9, %v423_v38, %v429_v39  ;;  %619 = vmatpush.msra.mxu2 %v584_v34  ;;  %v581_v38 = vld [vmem:[#allocation10 + $0x28] sm:$0xff]  ;;  %v580_v39 = vld [vmem:[#allocation10 + $0x20] sm:$0xff] }
 0x249   :  { %v402_v33 = vpop.xlane.xlu2 %401  ;;  %620 = vmatpush.msra.mxu2 %v583_v36 }
 0x24a   :  { %v424_v40 = vperm.slane %v402_v33, %v969_v27 }
 0x24b   :  { %v406_v44 = vpop.xlane.xlu0 %405  ;;  %v408_v49 = vpop.xlane.xlu1 %407  ;;  %621 = vmatpush.msra.mxu2 %v582_v37 }
 0x24c   :  { %v431_v46 = vsel %vm332_vm10, %v424_v40, %v430_v43  ;;  %v426_v50 = vperm.slane %v406_v44, %v969_v27  ;;  %v427_v54 = vperm.slane %v408_v49, %v969_v27  ;;  %v578_v43 = vld [vmem:[#allocation10 + $0x10] sm:$0xff]  ;;  %v577_v44 = vld [vmem:[#allocation10 + $0x8] sm:$0xff] }
 0x24d   :  { %622 = vmatpush.msra.mxu2 %v581_v38 }
 0x24f   :  { %623 = vmatpush.msra.mxu2 %v580_v39 }
 0x251   :  { %v404_v41 = vpop.xlane.xlu2 %403 }
 0x252   :  { %v425_v42 = vperm.slane %v404_v41, %v969_v27 }
 0x254   :  { %v432_v48 = vsel %vm334_vm11, %v425_v42, %v431_v46  ;;  %v579_v42 = vld [vmem:[#allocation10 + $0x18] sm:$0xff] }
 0x255   :  { %v433_v53 = vsel %vm336_vm12, %v426_v50, %v432_v48  ;;  %624 = vmatpush.msra.mxu2 %v579_v42  ;;  %v576_v48 = vld [vmem:[#allocation10] sm:$0xff] }
 0x256   :  { %v434_v58 = vsel %vm338_vm13, %v427_v54, %v433_v53 }
 0x257   :  { %625 = vmatpush.msra.mxu2 %v578_v43 }
 0x259   :  { %v410_v56 = vpop.xlane.xlu2 %409  ;;  %626 = vmatpush.msra.mxu2 %v577_v44 }
 0x25a   :  { %v428_v57 = vperm.slane %v410_v56, %v969_v27 }
 0x25b   :  { %627 = vmatpush.msra.mxu2 %v576_v48 }
 0x25c   :  { %v435_v59 = vsel %vm340_vm14, %v428_v57, %v434_v58 }
 0x25d   :  { %v437_v60 = vsel %vm412_vm15, %v435_v59, -inf }
 0x25e   :  { %v439_v61 = vsel %vm438_vm0, %v437_v60, -inf }
 0x25f   :  { %440 = vmax.xlane.f32.xlu0 %v439_v61 }
 0x2d2   :  { %v441_v62 = vpop.xlane.xlu0 %440 }
 0x2d3   :  { %v442_v63 = vsub.f32 %v437_v60, %v441_v62 }
 0x2d5   :  { %v443_v1 = vmul.f32 1.442695, %v442_v63 }
 0x2d7   :  { %715 = vpow2.f32 %v443_v1 }
 0x2dd   :  { %v716_v2 = vpop.eup %715 }
 0x2de   :  { %v445_v4 = vsel %vm438_vm0, %v716_v2, 0.0 }
 0x2df   :  { %446 = vadd.xlane.f32.xlu1 %v445_v4 }
 0x352   :  { %v447_v5 = vpop.xlane.xlu1 %446 }
 0x353   :  { %717 = vrcp.f32 %v447_v5  ;;  %v459_v8 = vand.u32 2147483648, %v447_v5  ;;  %v457_v10 = vand.u32 2147483647, %v447_v5  ;;  %vm453_vm2 = vweird.f32 %v447_v5 }
 0x355   :  { %v460_v12 = vor.u32 1.1754944e-38, %v459_v8  ;;  %vm458_vm4 = vcmp.eq.f32.partialorder %v457_v10, 8.507059e+37 }
 0x359   :  { %v718_v27 = vpop.eup %717 }
 0x35a   :  { %v449_v6 = vmul.f32 %v718_v27, %v447_v5  ;;  %vm454_vm1 = vweird.f32 %v718_v27 }
 0x35b   :  { %vm455_vm3 = vmor %vm453_vm2, %vm454_vm1 }
 0x35c   :  { %v450_v7 = vsub.f32 1.0, %v449_v6 }
 0x35e   :  { %v451_v9 = vmul.f32 %v718_v27, %v450_v7 }
 0x360   :  { %v452_v11 = vadd.f32 %v718_v27, %v451_v9 }
 0x362   :  { %v456_v13 = vsel %vm455_vm3, %v718_v27, %v452_v11 }
 0x363   :  { %v461_v14 = vsel %vm458_vm4, %v460_v12, %v456_v13 }
 0x364   :  { %v462_v16 = vmul.f32 %v716_v2, %v461_v14 }
 0x366   :  { %463 = vst.msk [vmem:[#allocation12] sm:$0xff] %vm438_vm0, %v462_v16  ;;  %v478_v17 = vperm.slane %v462_v16, 2  ;;  %v471_v18 = vperm.slane %v462_v16, 1  ;;  %v464_v19 = vperm.slane %v462_v16, 0  ;;  %v499_v20 = vperm.slane %v462_v16, 5 }
 0x367   :  { %v485_v21 = vperm.slane %v462_v16, 3  ;;  %v492_v22 = vperm.slane %v462_v16, 4  ;;  %v506_v23 = vperm.slane %v462_v16, 6  ;;  %v513_v24 = vperm.slane %v462_v16, 7  ;;  %654 = dma.vmem_to_hbm [thread:$0]  %s650_s29, 128, %s652_s10, [#allocation13]  }
 0x368   :  { %483 = vperm.xlu1 %711, %v478_v17   ;;  %476 = vperm.xlu0 %710, %v471_v18  }
 0x369   :  { %469 = vperm.xlu2 %712, %v464_v19  }
 0x370   :  { %504 = vperm.xlu1 %711, %v499_v20   ;;  %490 = vperm.xlu0 %710, %v485_v21  }
 0x371   :  { %497 = vperm.xlu2 %712, %v492_v22  }
 0x378   :  { %511 = vperm.xlu0 %710, %v506_v23  }
 0x379   :  { %518 = vperm.xlu2 %712, %v513_v24  }
 0x3c3   :  { %v470_v33 = vpop.permute.xlu2 %469 }
 0x3c4   :  { %v520_v41 = vmul.f32 %v470_v33, %v981_v47 }
 0x3c6   :  { %v528_v46 = vrot.slane %v520_v41, 4 }
 0x3c8   :  { %v529_v56 = vadd.f32 %v528_v46, %v520_v41 }
 0x3ca   :  { %v530_v62 = vrot.slane %v529_v56, 2 }
 0x3cb   :  { %v498_v40 = vpop.permute.xlu2 %497 }
 0x3cc   :  { %v524_v51 = vmul.f32 %v498_v40, %v983_v52  ;;  %v531_v6 = vadd.f32 %v530_v62, %v529_v56 }
 0x3ce   :  { %v552_v59 = vrot.slane %v524_v51, 4 }
 0x3d0   :  { %v553_v52 = vadd.f32 %v552_v59, %v524_v51 }
 0x3d2   :  { %v554_v12 = vrot.slane %v553_v52, 2 }
 0x3d3   :  { %v519_v57 = vpop.permute.xlu2 %518 }
 0x3d4   :  { %v527_v63 = vmul.f32 %v519_v57, %v1007_v35  ;;  %v532_v35 = vrot.slane %v531_v6, 1  ;;  %v555_v22 = vadd.f32 %v554_v12, %v553_v52 }
 0x3d6   :  { %v570_v7 = vrot.slane %v527_v63, 4  ;;  %v533_v23 = vadd.f32 %v532_v35, %v531_v6  ;;  %v556_v31 = vrot.slane %v555_v22, 1 }
 0x3d8   :  { %v571_v16 = vadd.f32 %v570_v7, %v527_v63  ;;  %v557_v40 = vadd.f32 %v556_v31, %v555_v22 }
 0x3da   :  { %v484_v49 = vpop.permute.xlu1 %483  ;;  %v477_v50 = vpop.permute.xlu0 %476  ;;  %v572_v24 = vrot.slane %v571_v16, 2 }
 0x3db   :  { %v522_v53 = vmul.f32 %v484_v49, %v996_v3  ;;  %v521_v54 = vmul.f32 %v477_v50, %v986_v55 }
 0x3dc   :  { %v573_v34 = vadd.f32 %v572_v24, %v571_v16 }
 0x3dd   :  { %v540_v47 = vrot.slane %v522_v53, 4  ;;  %v534_v58 = vrot.slane %v521_v54, 4 }
 0x3de   :  { %v574_v41 = vrot.slane %v573_v34, 1 }
 0x3df   :  { %v541_v60 = vadd.f32 %v540_v47, %v522_v53  ;;  %v535_v61 = vadd.f32 %v534_v58, %v521_v54  ;;  %v714_v53 = vld [vmem:[%s1077_s6] ss:$0 sm:$0xff] }
 0x3e0   :  { %v575_v48 = vadd.f32 %v574_v41, %v573_v34 }
 0x3e1   :  { %v542_v1 = vrot.slane %v541_v60, 2  ;;  %v536_v2 = vrot.slane %v535_v61, 2 }
 0x3e2   :  { %v505_v4 = vpop.permute.xlu1 %504  ;;  %v491_v5 = vpop.permute.xlu0 %490 }
 0x3e3   :  { %v537_v27 = vadd.f32 %v536_v2, %v535_v61  ;;  %v525_v3 = vmul.f32 %v505_v4, %v993_v0  ;;  %v523_v55 = vmul.f32 %v491_v5, %v979_v45  ;;  %v543_v8 = vadd.f32 %v542_v1, %v541_v60 }
 0x3e5   :  { %v558_v9 = vrot.slane %v525_v3, 4  ;;  %v546_v10 = vrot.slane %v523_v55, 4  ;;  %v538_v11 = vrot.slane %v537_v27, 1  ;;  %v544_v17 = vrot.slane %v543_v8, 1 }
 0x3e7   :  { %v559_v13 = vadd.f32 %v558_v9, %v525_v3  ;;  %v547_v14 = vadd.f32 %v546_v10, %v523_v55  ;;  %v539_v19 = vadd.f32 %v538_v11, %v537_v27  ;;  %v545_v25 = vadd.f32 %v544_v17, %v543_v8 }
 0x3e9   :  { %v548_v18 = vrot.slane %v547_v14, 2  ;;  %v560_v20 = vrot.slane %v559_v13, 2  ;;  %v604_v29 = vsel %vm328_vm8, %v539_v19, %v533_v23 }
 0x3ea   :  { %v512_v21 = vpop.permute.xlu0 %511  ;;  %v605_v37 = vsel %vm330_vm9, %v545_v25, %v604_v29 }
 0x3eb   :  { %v549_v0 = vadd.f32 %v548_v18, %v547_v14  ;;  %v526_v45 = vmul.f32 %v512_v21, %v1003_v15  ;;  %v561_v30 = vadd.f32 %v560_v20, %v559_v13 }
 0x3ed   :  { %v550_v26 = vrot.slane %v549_v0, 1  ;;  %v564_v28 = vrot.slane %v526_v45, 4  ;;  %v562_v38 = vrot.slane %v561_v30, 1 }
 0x3ef   :  { %v551_v32 = vadd.f32 %v550_v26, %v549_v0  ;;  %v565_v33 = vadd.f32 %v564_v28, %v526_v45  ;;  %v563_v44 = vadd.f32 %v562_v38, %v561_v30 }
 0x3f1   :  { %v566_v36 = vrot.slane %v565_v33, 2  ;;  %v606_v39 = vsel %vm332_vm10, %v551_v32, %v605_v37 }
 0x3f2   :  { %v607_v43 = vsel %vm334_vm11, %v557_v40, %v606_v39 }
 0x3f3   :  { %v567_v15 = vadd.f32 %v566_v36, %v565_v33  ;;  %v608_v49 = vsel %vm336_vm12, %v563_v44, %v607_v43 }
 0x3f5   :  { %v568_v42 = vrot.slane %v567_v15, 1 }
 0x3f7   :  { %v569_v46 = vadd.f32 %v568_v42, %v567_v15 }
 0x3f9   :  { %v609_v50 = vsel %vm338_vm13, %v569_v46, %v608_v49 }
 0x3fa   :  { %v610_v51 = vsel %vm340_vm14, %v575_v48, %v609_v50 }
 0x3fb   :  { %628 = vmatmul.f32.vlgmr.msra.gmra.mxu2 %v610_v51 }
 0x47e   :  { %v629_v54 = vpop.f32.mrf.mxu2 }
 0x47f   :  { %v630_v56 = vadd.f32 %v714_v53, %v629_v54 }
 0x481   :  { %632 = vst [vmem:[#allocation11] sm:$0xff] %v630_v56 }
 0x482   :  { %643 = dma.vmem_to_hbm [thread:$0]  %s639_s14, 128, %s641_s17, [#allocation4]  }
 0x483   :  { %893 = dma.done.wait [#allocation4], 128  }
 0x484   :  { %894 = vsyncadd [#allocation4], 4294967168 }
 0x485   :  { %895 = dma.done.wait [#allocation13], 128  }
 0x486   :  { %896 = vsyncadd [#allocation13], 4294967168 }
 0x487   :  { %663 = vsyncpa [#allocation3], 1 }
 0x488   :  { %664 = vsyncpa [#allocation6], 1 }
 0x489   :  { %665 = vsyncpa [#allocation9], 1 }
 0x48a   :  { %666 = vsyncpa [#allocation4], 1 }
 0x48b   :  { %667 = vsyncpa [#allocation13], 1 }

</bundles_post_ra>
